<compile_context>
chip_gen: v6e
topology: v6e:2x2x1
jax: 0.10.0
libtpu: 0.0.40
codegen_flags: <defaults>
</compile_context>

<pallas_src>
import functools

import jax
import jax.numpy as jnp
from jax import lax
from jax.experimental import pallas as pl
from jax.experimental.pallas import tpu as pltpu


_VMEM_LIMIT_BYTES = 48 << 20   # safe on v5e/v6e (128 MiB VMEM) and v7x (64 MiB)


def _row_tile(rows, d, itemsize=4):
    """Rows per grid step.

    Sized so that the live streamed tiles (2 inputs + 1 output, double
    buffered -> ~8 tile-equivalents incl. temporaries) stay ~16 MiB, i.e.
    comfortably inside v7x's 32 MiB scoped VMEM; v5e/v6e have more headroom.
    """
    budget_rows = max(8, (16 << 20) // (8 * d * itemsize))
    tile = min(1024, budget_rows, rows)
    if tile == rows:
        return rows                       # full-array block is always legal
    return max(8, (tile // 8) * 8)        # multiple of 8 sublanes; cdiv grid pads tail


# ------------------------------ shared math ---------------------------------

def _layernorm_f32(x, gamma, beta, eps):
    """Torch-exact LayerNorm on an f32 tile: mean + unbiased std (N-1)."""
    d = x.shape[-1]
    mean = jnp.mean(x, axis=-1, keepdims=True)
    diff = x - mean
    var = jnp.sum(diff * diff, axis=-1, keepdims=True) * (1.0 / (d - 1))
    std = jnp.sqrt(var)
    # One divide per ROW (shape (rows,1)); do NOT fold eps into an rsqrt --
    # torch's formula is a_2*(x-mean)/(std+eps)+b_2 and we match it exactly.
    inv = 1.0 / (std + eps)
    return diff * inv * gamma + beta


def _dropout_keep_mask(shape, row_start, d, seed_i32, rate):
    """Counter-based hash PRNG keep-mask (stateless, works on TPU + interpret).

    Keyed on the GLOBAL element index, so different grid tiles (and the two
    TensorCores under megacore) automatically get independent masks with the
    same seed.  int32 wrap-around in the index is fine: it only feeds a hash.
    """
    r = lax.broadcasted_iota(jnp.int32, shape, 0) + row_start
    c = lax.broadcasted_iota(jnp.int32, shape, 1)
    x = (r * jnp.int32(d) + c).astype(jnp.uint32)
    x = x + seed_i32.astype(jnp.uint32) * jnp.uint32(0x9E3779B9)
    # xxhash/murmur-style avalanche (uint32 wrapping arithmetic, pure VPU ops).
    x = x ^ (x >> 16)
    x = x * jnp.uint32(0x7FEB352D)
    x = x ^ (x >> 15)
    x = x * jnp.uint32(0x846CA68B)
    x = x ^ (x >> 16)
    # P(keep) = 1 - rate (floor bias ~2^-32, negligible).
    threshold = jnp.uint32(min(int(rate * (2 ** 32)), 2 ** 32 - 1))
    return x >= threshold


def _apply_dropout(y, rate, row_start, seed_scalar):
    if rate >= 1.0:
        return jnp.zeros_like(y)
    if rate <= 0.0:
        return y
    keep = _dropout_keep_mask(y.shape, row_start, y.shape[-1], seed_scalar, rate)
    scale = jnp.float32(1.0 / (1.0 - rate))       # inverted dropout
    return jnp.where(keep, y * scale, jnp.zeros_like(y))


# --------------------- fused path: sublayer is a Linear ----------------------

def _fused_kernel(seed_ref, x_ref, w_ref, wb_ref, g_ref, b_ref, o_ref, *,
                  eps, rate, tile_r):
    x = x_ref[...].astype(jnp.float32)                                # (TR, D)
    normed = _layernorm_f32(x, g_ref[...].astype(jnp.float32),
                            b_ref[...].astype(jnp.float32), eps)
    # Sublayer Linear on the MXU, f32 accumulation, full-f32 precision so the
    # result matches the plain-JAX reference tightly.
    y = jnp.dot(normed.astype(w_ref.dtype), w_ref[...],
                preferred_element_type=jnp.float32,
                precision=lax.Precision.HIGHEST)
    y = y + wb_ref[...].astype(jnp.float32)
    if rate > 0.0:
        row_start = pl.program_id(0) * tile_r
        y = _apply_dropout(y, rate, row_start, seed_ref[0])
    o_ref[...] = (x + y).astype(o_ref.dtype)


def sublayer_connection_fused_linear(x, w, w_bias, gamma, beta, *,
                                     dropout_rate, seed, training=True,
                                     eps=1e-6):
    """x + dropout(Linear(LayerNorm(x))) in a single Pallas kernel."""
    b, s, d = x.shape
    assert w.shape == (d, d), "residual requires the sublayer to preserve D"
    rows = b * s
    x2d = x.reshape(rows, d)
    rate = float(dropout_rate) if training else 0.0
    tile_r = _row_tile(rows, d)

    out2d = pl.pallas_call(
        functools.partial(_fused_kernel, eps=eps, rate=rate, tile_r=tile_r),
        out_shape=jax.ShapeDtypeStruct((rows, d), x.dtype),
        grid_spec=pltpu.PrefetchScalarGridSpec(
            num_scalar_prefetch=1,                      # seed lives in SMEM
            grid=(pl.cdiv(rows, tile_r),),
            in_specs=[
                pl.BlockSpec((tile_r, d), lambda i, s_ref: (i, 0)),   # x
                pl.BlockSpec((d, d), lambda i, s_ref: (0, 0)),        # W (resident)
                pl.BlockSpec((1, d), lambda i, s_ref: (0, 0)),        # linear bias
                pl.BlockSpec((1, d), lambda i, s_ref: (0, 0)),        # gamma (a_2)
                pl.BlockSpec((1, d), lambda i, s_ref: (0, 0)),        # beta  (b_2)
            ],
            out_specs=pl.BlockSpec((tile_r, d), lambda i, s_ref: (i, 0)),
        ),
        compiler_params=pltpu.CompilerParams(
            dimension_semantics=("parallel",),          # shard rows across TCs
            vmem_limit_bytes=_VMEM_LIMIT_BYTES,
        ),
    )(jnp.array([seed], jnp.int32), x2d, w, w_bias.reshape(1, d),
      gamma.reshape(1, d), beta.reshape(1, d))
    return out2d.reshape(b, s, d)


# --------------- generic path: arbitrary (opaque) sublayer -------------------

def _layernorm_kernel(x_ref, g_ref, b_ref, o_ref, *, eps):
    x = x_ref[...].astype(jnp.float32)
    out = _layernorm_f32(x, g_ref[...].astype(jnp.float32),
                         b_ref[...].astype(jnp.float32), eps)
    o_ref[...] = out.astype(o_ref.dtype)


def layernorm(x2d, gamma, beta, *, eps=1e-6):
    rows, d = x2d.shape
    tile_r = _row_tile(rows, d)
    return pl.pallas_call(
        functools.partial(_layernorm_kernel, eps=eps),
        out_shape=jax.ShapeDtypeStruct((rows, d), x2d.dtype),
        grid_spec=pltpu.PrefetchScalarGridSpec(
            num_scalar_prefetch=0,
            grid=(pl.cdiv(rows, tile_r),),
            in_specs=[
                pl.BlockSpec((tile_r, d), lambda i: (i, 0)),
                pl.BlockSpec((1, d), lambda i: (0, 0)),
                pl.BlockSpec((1, d), lambda i: (0, 0)),
            ],
            out_specs=pl.BlockSpec((tile_r, d), lambda i: (i, 0)),
        ),
        compiler_params=pltpu.CompilerParams(
            dimension_semantics=("parallel",),
            vmem_limit_bytes=_VMEM_LIMIT_BYTES,
        ),
    )(x2d, gamma.reshape(1, d), beta.reshape(1, d))


def _residual_dropout_kernel(seed_ref, x_ref, y_ref, o_ref, *, rate, tile_r):
    x = x_ref[...].astype(jnp.float32)
    y = y_ref[...].astype(jnp.float32)
    if rate > 0.0:
        row_start = pl.program_id(0) * tile_r
        y = _apply_dropout(y, rate, row_start, seed_ref[0])
    o_ref[...] = (x + y).astype(o_ref.dtype)


def residual_dropout(x2d, y2d, *, rate, seed):
    rows, d = x2d.shape
    tile_r = _row_tile(rows, d)
    return pl.pallas_call(
        functools.partial(_residual_dropout_kernel, rate=rate, tile_r=tile_r),
        out_shape=jax.ShapeDtypeStruct((rows, d), x2d.dtype),
        grid_spec=pltpu.PrefetchScalarGridSpec(
            num_scalar_prefetch=1,
            grid=(pl.cdiv(rows, tile_r),),
            in_specs=[
                pl.BlockSpec((tile_r, d), lambda i, s_ref: (i, 0)),   # x (residual)
                pl.BlockSpec((tile_r, d), lambda i, s_ref: (i, 0)),   # y (sublayer)
            ],
            out_specs=pl.BlockSpec((tile_r, d), lambda i, s_ref: (i, 0)),
        ),
        compiler_params=pltpu.CompilerParams(
            dimension_semantics=("parallel",),
            vmem_limit_bytes=_VMEM_LIMIT_BYTES,
        ),
        # Reuse one of the same-shaped input slabs for the output (each tile is
        # read before its aliased tile is written, so this is race-free).
        input_output_aliases={1: 0},
    )(jnp.array([seed], jnp.int32), x2d, y2d)


def sublayer_connection(x, sublayer, gamma, beta, *, dropout_rate, seed,
                        training=True, eps=1e-6):
    """Generic path: x + dropout(sublayer(LayerNorm(x))), opaque sublayer."""
    b, s, d = x.shape
    x2d = x.reshape(b * s, d)
    normed = layernorm(x2d, gamma, beta, eps=eps)            # Pallas kernel
    y = sublayer(normed.reshape(b, s, d))                    # arbitrary JAX glue
    y2d = y.reshape(b * s, d).astype(x2d.dtype)
    rate = float(dropout_rate) if training else 0.0
    out2d = residual_dropout(x2d, y2d, rate=rate, seed=seed)  # Pallas kernel
    return out2d.reshape(b, s, d)


# ---------------------------------- main -------------------------------------

if __name__ == "__main__":
    B, S, D = 2, 8, 128          # D multiple of 128 -> lane-dense tiles/stores
    dropout_p = 0.1

    key = jax.random.PRNGKey(0)
    kx, kw, kb = jax.random.split(key, 3)

    x = jax.random.normal(kx, (B, S, D), dtype=jnp.float32)

    # LayerNorm params (as in the module __init__: ones / zeros).
    gamma = jnp.ones((D,), jnp.float32)
    beta = jnp.zeros((D,), jnp.float32)

    # Demo sublayer: a deterministic Linear(D, D).
    w = jax.random.normal(kw, (D, D), dtype=jnp.float32) * 0.05
    bias = jax.random.normal(kb, (D,), dtype=jnp.float32) * 0.01
    sublayer = lambda t: jnp.einsum("bsd,de->bse", t, w,
                                    precision="highest") + bias

    # --- pure-JAX reference (dropout disabled) ---
    mean = jnp.mean(x, axis=-1, keepdims=True)
    std = jnp.std(x, axis=-1, keepdims=True, ddof=1)
    normed_ref = gamma * (x - mean) / (std + 1e-6) + beta
    ref = x + sublayer(normed_ref)

    # --- fused single-kernel path (LN + Linear + dropout + residual) ---
    out_fused_eval = sublayer_connection_fused_linear(
        x, w, bias, gamma, beta, dropout_rate=dropout_p, seed=0, training=False)
    assert jnp.allclose(out_fused_eval, ref, atol=1e-4, rtol=1e-4), \
        "fused path mismatch vs reference"

    # --- generic two-kernel path (opaque sublayer) ---
    out_generic_eval = sublayer_connection(
        x, sublayer, gamma, beta, dropout_rate=dropout_p, seed=0, training=False)
    assert jnp.allclose(out_generic_eval, ref, atol=1e-4, rtol=1e-4), \
        "generic path mismatch vs reference"

    # --- training-mode runs (dropout active, deterministic counter-hash PRNG) ---
    out_fused_train = sublayer_connection_fused_linear(
        x, w, bias, gamma, beta, dropout_rate=dropout_p, seed=1234, training=True)
    out_generic_train = sublayer_connection(
        x, sublayer, gamma, beta, dropout_rate=dropout_p, seed=1234, training=True)
    assert bool(jnp.all(jnp.isfinite(out_fused_train)))
    assert bool(jnp.all(jnp.isfinite(out_generic_train)))

    jax.block_until_ready((out_fused_eval, out_generic_eval,
                           out_fused_train, out_generic_train))
    print("KERNEL_OK")
</pallas_src>

<mosaic_0001>
module attributes {stable_mosaic.version = 11 : i64} {
  func.func @_fused_kernel(%arg0: i32, %arg1: memref<1xi32, #tpu.memory_space<smem>>, %arg2: memref<16x128xf32, #tpu.memory_space<vmem>>, %arg3: memref<128x128xf32, #tpu.memory_space<vmem>>, %arg4: memref<1x128xf32, #tpu.memory_space<vmem>>, %arg5: memref<1x128xf32, #tpu.memory_space<vmem>>, %arg6: memref<1x128xf32, #tpu.memory_space<vmem>>, %arg7: memref<16x128xf32, #tpu.memory_space<vmem>>) attributes {dimension_semantics = [#tpu.dimension_semantics<parallel>], iteration_bounds = array<i64: 1>, scalar_prefetch = 1 : i64, scratch_operands = 0 : i64, tpu.core_type = #tpu.core_type<tc>, window_params = [{transform_indices = @transform_0, window_bounds = array<i64: 16, 128>}, {pipeline_mode = #tpu.pipeline_mode<synchronous>, transform_indices = @transform_1, window_bounds = array<i64: 128, 128>}, {pipeline_mode = #tpu.pipeline_mode<synchronous>, transform_indices = @transform_2, window_bounds = array<i64: 1, 128>}, {pipeline_mode = #tpu.pipeline_mode<synchronous>, transform_indices = @transform_3, window_bounds = array<i64: 1, 128>}, {pipeline_mode = #tpu.pipeline_mode<synchronous>, transform_indices = @transform_4, window_bounds = array<i64: 1, 128>}, {transform_indices = @transform_5, window_bounds = array<i64: 16, 128>}]} {
    %c0 = arith.constant 0 : index
    %c0_0 = arith.constant 0 : index
    %0 = vector.load %arg2[%c0, %c0_0] : memref<16x128xf32, #tpu.memory_space<vmem>>, vector<16x128xf32>
    %c0_1 = arith.constant 0 : index
    %c0_2 = arith.constant 0 : index
    %1 = vector.load %arg5[%c0_1, %c0_2] : memref<1x128xf32, #tpu.memory_space<vmem>>, vector<1x128xf32>
    %c0_3 = arith.constant 0 : index
    %c0_4 = arith.constant 0 : index
    %2 = vector.load %arg6[%c0_3, %c0_4] : memref<1x128xf32, #tpu.memory_space<vmem>>, vector<1x128xf32>
    %cst = arith.constant dense<0.000000e+00> : vector<16xf32>
    %3 = vector.multi_reduction <add>, %0, %cst [1] : vector<16x128xf32> to vector<16xf32>
    %4 = vector.shape_cast %3 : vector<16xf32> to vector<16x1xf32>
    %cst_5 = arith.constant 1.280000e+02 : f32
    %5 = vector.broadcast %cst_5 : f32 to vector<16x1xf32>
    %6 = arith.divf %4, %5 : vector<16x1xf32>
    %7 = vector.broadcast %6 : vector<16x1xf32> to vector<16x128xf32>
    %8 = arith.subf %0, %7 : vector<16x128xf32>
    %9 = arith.mulf %8, %8 : vector<16x128xf32>
    %cst_6 = arith.constant dense<0.000000e+00> : vector<16xf32>
    %10 = vector.multi_reduction <add>, %9, %cst_6 [1] : vector<16x128xf32> to vector<16xf32>
    %11 = vector.shape_cast %10 : vector<16xf32> to vector<16x1xf32>
    %cst_7 = arith.constant 0.00787401571 : f32
    %12 = vector.broadcast %cst_7 : f32 to vector<16x1xf32>
    %13 = arith.mulf %11, %12 : vector<16x1xf32>
    %14 = math.sqrt %13 : vector<16x1xf32>
    %cst_8 = arith.constant 9.99999997E-7 : f32
    %15 = vector.broadcast %cst_8 : f32 to vector<16x1xf32>
    %16 = arith.addf %14, %15 : vector<16x1xf32>
    %cst_9 = arith.constant 1.000000e+00 : f32
    %17 = vector.broadcast %cst_9 : f32 to vector<16x1xf32>
    %18 = arith.divf %17, %16 : vector<16x1xf32>
    %19 = vector.broadcast %18 : vector<16x1xf32> to vector<16x128xf32>
    %20 = arith.mulf %8, %19 : vector<16x128xf32>
    %21 = vector.broadcast %1 : vector<1x128xf32> to vector<16x128xf32>
    %22 = arith.mulf %20, %21 : vector<16x128xf32>
    %23 = vector.broadcast %2 : vector<1x128xf32> to vector<16x128xf32>
    %24 = arith.addf %22, %23 : vector<16x128xf32>
    %c0_10 = arith.constant 0 : index
    %c0_11 = arith.constant 0 : index
    %25 = vector.load %arg3[%c0_10, %c0_11] : memref<128x128xf32, #tpu.memory_space<vmem>>, vector<128x128xf32>
    %cst_12 = arith.constant dense<0.000000e+00> : vector<16x128xf32>
    %26 = tpu.matmul %24, %25, %cst_12 {dimension_numbers = #tpu.dot_dimension_numbers<[1], [0], [0], [1], [0, 0, 1, 1], [], []>, precision = #tpu.contract_precision<fp32>} : vector<16x128xf32>, vector<128x128xf32>, vector<16x128xf32> -> vector<16x128xf32>
    %c0_13 = arith.constant 0 : index
    %c0_14 = arith.constant 0 : index
    %27 = vector.load %arg4[%c0_13, %c0_14] : memref<1x128xf32, #tpu.memory_space<vmem>>, vector<1x128xf32>
    %28 = vector.broadcast %27 : vector<1x128xf32> to vector<16x128xf32>
    %29 = arith.addf %26, %28 : vector<16x128xf32>
    %30 = arith.addf %0, %29 : vector<16x128xf32>
    %c0_15 = arith.constant 0 : index
    %c0_16 = arith.constant 0 : index
    %31 = vector.load %arg7[%c0_15, %c0_16] : memref<16x128xf32, #tpu.memory_space<vmem>>, vector<16x128xf32>
    tpu.vector_store %arg7[%c0_15, %c0_16], %30 {strides = array<i32>} : memref<16x128xf32, #tpu.memory_space<vmem>>, vector<16x128xf32>,
    return
  }
  func.func @transform_0(%arg0: i32, %arg1: memref<1xi32, #tpu.memory_space<smem>>) -> (i32, i32) {
    %c0_i32 = arith.constant 0 : i32
    %c0_i32_0 = arith.constant 0 : i32
    return %arg0, %c0_i32 : i32, i32
  }
  func.func @transform_1(%arg0: i32, %arg1: memref<1xi32, #tpu.memory_space<smem>>) -> (i32, i32) {
    %c0_i32 = arith.constant 0 : i32
    %c0_i32_0 = arith.constant 0 : i32
    %c0_i32_1 = arith.constant 0 : i32
    return %c0_i32, %c0_i32_0 : i32, i32
  }
  func.func @transform_2(%arg0: i32, %arg1: memref<1xi32, #tpu.memory_space<smem>>) -> (i32, i32) {
    %c0_i32 = arith.constant 0 : i32
    %c0_i32_0 = arith.constant 0 : i32
    %c0_i32_1 = arith.constant 0 : i32
    return %c0_i32, %c0_i32_0 : i32, i32
  }
  func.func @transform_3(%arg0: i32, %arg1: memref<1xi32, #tpu.memory_space<smem>>) -> (i32, i32) {
    %c0_i32 = arith.constant 0 : i32
    %c0_i32_0 = arith.constant 0 : i32
    %c0_i32_1 = arith.constant 0 : i32
    return %c0_i32, %c0_i32_0 : i32, i32
  }
  func.func @transform_4(%arg0: i32, %arg1: memref<1xi32, #tpu.memory_space<smem>>) -> (i32, i32) {
    %c0_i32 = arith.constant 0 : i32
    %c0_i32_0 = arith.constant 0 : i32
    %c0_i32_1 = arith.constant 0 : i32
    return %c0_i32, %c0_i32_0 : i32, i32
  }
  func.func @transform_5(%arg0: i32, %arg1: memref<1xi32, #tpu.memory_space<smem>>) -> (i32, i32) {
    %c0_i32 = arith.constant 0 : i32
    %c0_i32_0 = arith.constant 0 : i32
    return %arg0, %c0_i32 : i32, i32
  }
}

</mosaic_0001>

<bundles_post_ra>
// kernel: tpu_custom_call.1
= control target key start
LH: loop header
LB: loop body
LE: loop exit
PB: predicated region body
PF: predicated region fallthrough
CT: control target
= control target key end

     0   :  { %12 = vsyncpa [#allocation5], 0  ;;  %s1663_s0 = inlined_call_operand.<no memory space> [shape: s32[1], index: 0, kind: input, shape index: {}]   ;;  %s1664_s1 = inlined_call_operand.hbm [shape: f32[16,128], index: 1, kind: input, shape index: {}]   ;;  %s1665_s2 = inlined_call_operand.hbm [shape: f32[128,128], index: 2, kind: input, shape index: {}]   ;;  %s1666_s3 = inlined_call_operand.vmem [shape: f32[1,128], index: 3, kind: input, shape index: {}]   ;;  %s1667_s4 = inlined_call_operand.vmem [shape: f32[1,128], index: 4, kind: input, shape index: {}]   ;;  %s1668_s5 = inlined_call_operand.vmem [shape: f32[1,128], index: 5, kind: input, shape index: {}]   ;;  %s1669_s6 = inlined_call_operand.hbm [shape: f32[16,128], index: 6, kind: output, shape index: {}]  }
   0x1   :  { %13 = vsyncpa [#allocation8], 0 }
   0x2   :  { %14 = vsyncpa [#allocation6], 0  ;;  %s1239_s0 = smov [#allocation4]  }
   0x3   :  { %s20_s21 = sshll.u32 %s1239_s0, 4  ;;  %s21_s21 = int_to_ptr.vmem [resolvable:$true] %s20_s21 }
   0x4   :  { %s1181_s22 = scalar_lea.vmem %s21_s21, 256  ;;  %p1186_p1 = scmp.lt.s32.totalorder %s21_s21, %s21_s21 }
   0x5   :  { %p1182_p0 = scmp.ne.s32.totalorder %s21_s21, %s1181_s22  ;;  %p1187_p2 = scmp.lt.s32.totalorder %s1181_s22, %s1181_s22 }
   0x7   :  { %p1188_p3 = por %p1187_p2, %p1186_p1 }
   0x9   :  { %p1189_p4 = pnand %p1188_p3, %p1182_p0 }
   0xb   :  { %1192 = shalt.err (!%p1189_p4)
}
   0xc   :  { %s1240_s23 = smov 128   ;;  %s1241_s24 = smov 8  }
   0xd   :  { %26 = dma.hbm_to_vmem [thread:$0]  %s1664_s1, 256, %s21_s21, [#allocation5], %s1240_s23, %s1240_s23, %s1241_s24  }
   0xe   :  { %s1242_s27 = smov [#allocation7]  }
   0xf   :  { %s32_s28 = sshll.u32 %s1242_s27, 4  ;;  %s33_s28 = int_to_ptr.vmem [resolvable:$true] %s32_s28 }
  0x10   :  { %s1201_s29 = scalar_lea.vmem %s33_s28, 2048  ;;  %p1206_p6 = scmp.lt.s32.totalorder %s33_s28, %s33_s28 }
  0x11   :  { %p1202_p5 = scmp.ne.s32.totalorder %s33_s28, %s1201_s29  ;;  %p1207_p7 = scmp.lt.s32.totalorder %s1201_s29, %s1201_s29 }
  0x13   :  { %p1208_p8 = por %p1207_p7, %p1206_p6 }
  0x15   :  { %p1209_p9 = pnand %p1208_p8, %p1202_p5 }
  0x17   :  { %1212 = shalt.err (!%p1209_p9)
}
  0x18   :  { %38 = dma.hbm_to_vmem [thread:$0]  %s1665_s2, 2048, %s33_s28, [#allocation8], %s1240_s23, %s1240_s23, %s1241_s24  }
  0x19   :  { %1233 = dma.done.wait [#allocation5], 256  }
  0x1a   :  { %1234 = vsyncadd [#allocation5], 4294967040 }
  0x1b   :  { %1235 = dma.done.wait [#allocation8], 2048  }
  0x1c   :  { %1236 = vsyncadd [#allocation8], 4294965248  ;;  %v1291_v0 = vld [vmem:[#allocation4] sm:$0xff]  ;;  %v1294_v1 = vld [vmem:[#allocation4 + $0x8] sm:$0xff] }
  0x1d   :  { %1674 = vst [vmem:[#allocation13_spill] sm:$0xff] %v1291_v0  ;;  %55 = vadd.xlane.f32.xlu0 %v1291_v0  ;;  %1675 = vst [vmem:[#allocation14_spill] sm:$0xff] %v1294_v1  ;;  %v125_v10 = vld [vmem:[#allocation7 + $0x78] sm:$0xff]  ;;  %v124_v12 = vld [vmem:[#allocation7 + $0x70] sm:$0xff] }
  0x1e   :  { %v1307_v11 = vand.u32 4294901760, %v125_v10  ;;  %v1312_v14 = vand.u32 4294901760, %v124_v12  ;;  %v123_v15 = vld [vmem:[#allocation7 + $0x68] sm:$0xff]  ;;  %v122_v19 = vld [vmem:[#allocation7 + $0x60] sm:$0xff]  ;;  %v121_v24 = vld [vmem:[#allocation7 + $0x58] sm:$0xff] }
  0x1f   :  { %v1322_v18 = vand.u32 4294901760, %v123_v15  ;;  %v1334_v23 = vand.u32 4294901760, %v122_v19  ;;  %v1347_v29 = vand.u32 4294901760, %v121_v24  ;;  %v120_v30 = vld [vmem:[#allocation7 + $0x50] sm:$0xff]  ;;  %v119_v36 = vld [vmem:[#allocation7 + $0x48] sm:$0xff]  ;;  %v118_v42 = vld [vmem:[#allocation7 + $0x40] sm:$0xff] }
  0x20   :  { %v1310_v13 = vsub.f32 %v125_v10, %v1307_v11  ;;  %950 = vmatprep.subr.mxu0 %v1307_v11  ;;  %v1320_v17 = vsub.f32 %v124_v12, %v1312_v14  ;;  %v1355_v34 = vand.u32 4294901760, %v120_v30  ;;  %v1366_v40 = vand.u32 4294901760, %v119_v36  ;;  %v117_v48 = vld [vmem:[#allocation7 + $0x38] sm:$0xff]  ;;  %v116_v54 = vld [vmem:[#allocation7 + $0x30] sm:$0xff]  ;;  %v115_v60 = vld [vmem:[#allocation7 + $0x28] sm:$0xff] }
  0x21   :  { %57 = vadd.xlane.f32.xlu0 %v1294_v1  ;;  %951 = vmatpush3.msra.mxu0 %v1307_v11  ;;  %v1332_v22 = vsub.f32 %v123_v15, %v1322_v18  ;;  %v1344_v28 = vsub.f32 %v122_v19, %v1334_v23  ;;  %v1358_v35 = vsub.f32 %v121_v24, %v1347_v29  ;;  %v1379_v46 = vand.u32 4294901760, %v118_v42  ;;  %v111_v19 = vld [vmem:[#allocation7 + $0x8] sm:$0xff] }
  0x22   :  { %v1317_v16 = vand.u32 4294901760, %v1310_v13  ;;  %952 = vmatprep.subr.mxu0 %v1312_v14  ;;  %v1329_v21 = vand.u32 4294901760, %v1320_v17  ;;  %v1364_v39 = vsub.f32 %v120_v30, %v1355_v34  ;;  %v1377_v45 = vsub.f32 %v119_v36, %v1366_v40 }
  0x23   :  { %953 = vmatpush3.msra.mxu0 %v1312_v14  ;;  %v1341_v27 = vand.u32 4294901760, %v1332_v22  ;;  %v1353_v33 = vand.u32 4294901760, %v1344_v28  ;;  %v1370_v41 = vand.u32 4294901760, %v1358_v35  ;;  %v1391_v51 = vsub.f32 %v118_v42, %v1379_v46 }
  0x24   :  { %v238_v20 = vsub.f32 %v1310_v13, %v1317_v16  ;;  %954 = vmatprep.subr.mxu0 %v1322_v18  ;;  %v245_v26 = vsub.f32 %v1320_v17, %v1329_v21  ;;  %v1374_v44 = vand.u32 4294901760, %v1364_v39  ;;  %v1388_v50 = vand.u32 4294901760, %v1377_v45 }
  0x25   :  { %955 = vmatpush3.msra.mxu0 %v1322_v18  ;;  %v252_v32 = vsub.f32 %v1332_v22, %v1341_v27  ;;  %v259_v38 = vsub.f32 %v1344_v28, %v1353_v33  ;;  %v266_v47 = vsub.f32 %v1358_v35, %v1370_v41  ;;  %v1393_v52 = vand.u32 4294901760, %v117_v48 }
  0x26   :  { %v239_v25 = vand.u32 4294901760, %v238_v20  ;;  %956 = vmatprep.subr.mxu0 %v1334_v23  ;;  %v246_v31 = vand.u32 4294901760, %v245_v26  ;;  %v273_v49 = vsub.f32 %v1364_v39, %v1374_v44  ;;  %v280_v56 = vsub.f32 %v1377_v45, %v1388_v50 }
  0x27   :  { %957 = vmatpush3.msra.mxu0 %v1334_v23  ;;  %v253_v37 = vand.u32 4294901760, %v252_v32  ;;  %v260_v43 = vand.u32 4294901760, %v259_v38  ;;  %v267_v53 = vand.u32 4294901760, %v266_v47  ;;  %v1400_v57 = vand.u32 4294901760, %v1391_v51 }
  0x28   :  { %985 = vmatprep.subr.mxu1 %v239_v25  ;;  %958 = vmatprep.subr.mxu0 %v1347_v29  ;;  %v274_v55 = vand.u32 4294901760, %v273_v49  ;;  %v1403_v58 = vsub.f32 %v117_v48, %v1393_v52  ;;  %v1406_v59 = vand.u32 4294901760, %v116_v54  ;;  %v281_v61 = vand.u32 4294901760, %v280_v56 }
  0x29   :  { %986 = vmatpush3.msra.mxu1 %v239_v25  ;;  %959 = vmatpush3.msra.mxu0 %v1347_v29  ;;  %v287_v62 = vsub.f32 %v1391_v51, %v1400_v57  ;;  %v1437_v26 = vand.u32 4294901760, %v111_v19 }
  0x2a   :  { %987 = vmatprep.subr.mxu1 %v246_v31  ;;  %960 = vmatprep.subr.mxu0 %v1355_v34  ;;  %v1412_v63 = vand.u32 4294901760, %v1403_v58 }
  0x2b   :  { %988 = vmatpush3.msra.mxu1 %v246_v31  ;;  %961 = vmatpush3.msra.mxu0 %v1355_v34  ;;  %v1455_v42 = vsub.f32 %v111_v19, %v1437_v26 }
  0x2c   :  { %989 = vmatprep.subr.mxu1 %v253_v37  ;;  %962 = vmatprep.subr.mxu0 %v1366_v40  ;;  %v294_v10 = vsub.f32 %v1403_v58, %v1412_v63 }
  0x2d   :  { %990 = vmatpush3.msra.mxu1 %v253_v37  ;;  %963 = vmatpush3.msra.mxu0 %v1366_v40 }
  0x2e   :  { %991 = vmatprep.subr.mxu1 %v260_v43  ;;  %964 = vmatprep.subr.mxu0 %v1379_v46  ;;  %v295_v30 = vand.u32 4294901760, %v294_v10 }
  0x2f   :  { %992 = vmatpush3.msra.mxu1 %v260_v43  ;;  %965 = vmatpush3.msra.mxu0 %v1379_v46 }
  0x30   :  { %993 = vmatprep.subr.mxu1 %v267_v53  ;;  %966 = vmatprep.subr.mxu0 %v1393_v52 }
  0x31   :  { %994 = vmatpush3.msra.mxu1 %v267_v53  ;;  %967 = vmatpush3.msra.mxu0 %v1393_v52 }
  0x32   :  { %995 = vmatprep.subr.mxu1 %v274_v55  ;;  %968 = vmatprep.subr.mxu0 %v1406_v59 }
  0x33   :  { %996 = vmatpush3.msra.mxu1 %v274_v55  ;;  %969 = vmatpush3.msra.mxu0 %v1406_v59 }
  0x34   :  { %997 = vmatprep.subr.mxu1 %v281_v61 }
  0x35   :  { %998 = vmatpush3.msra.mxu1 %v281_v61 }
  0xa6   :  { %v56_v2 = vpop.xlane.xlu0 %55 }
  0xa7   :  { %v60_v3 = vmul.f32 0.0078125, %v56_v2  ;;  %v1414_v2 = vand.u32 4294901760, %v115_v60 }
  0xa9   :  { %v1298_v4 = vsub.f32 %v1291_v0, %v60_v3  ;;  %v1418_v3 = vsub.f32 %v116_v54, %v1406_v59  ;;  %v1424_v12 = vsub.f32 %v115_v60, %v1414_v2  ;;  %970 = vmatprep.subr.mxu0 %v1414_v2  ;;  %v1470_v54 = vand.u32 4294901760, %v1455_v42 }
  0xaa   :  { %v58_v5 = vpop.xlane.xlu0 %57  ;;  %971 = vmatpush3.msra.mxu0 %v1414_v2 }
  0xab   :  { %v61_v6 = vmul.f32 0.0078125, %v58_v5  ;;  %v64_v7 = vmul.f32 %v1298_v4, %v1298_v4  ;;  %v114_v5 = vld [vmem:[#allocation7 + $0x20] sm:$0xff]  ;;  %v1430_v20 = vand.u32 4294901760, %v1418_v3  ;;  %v1440_v31 = vand.u32 4294901760, %v1424_v12 }
  0xac   :  { %v1426_v15 = vand.u32 4294901760, %v114_v5 }
  0xad   :  { %v1303_v8 = vsub.f32 %v1294_v1, %v61_v6  ;;  %66 = vadd.xlane.f32.xlu1 %v64_v7  ;;  %v113_v6 = vld [vmem:[#allocation7 + $0x18] sm:$0xff]  ;;  %v112_v7 = vld [vmem:[#allocation7 + $0x10] sm:$0xff]  ;;  %v301_v36 = vsub.f32 %v1418_v3, %v1430_v20  ;;  %v308_v43 = vsub.f32 %v1424_v12, %v1440_v31 }
  0xae   :  { %v1432_v24 = vand.u32 4294901760, %v113_v6  ;;  %v1434_v25 = vand.u32 4294901760, %v112_v7  ;;  %v1443_v32 = vsub.f32 %v114_v5, %v1426_v15  ;;  %972 = vmatprep.subr.mxu0 %v1426_v15 }
  0xaf   :  { %v65_v9 = vmul.f32 %v1303_v8, %v1303_v8  ;;  %v302_v48 = vand.u32 4294901760, %v301_v36  ;;  %973 = vmatpush3.msra.mxu0 %v1426_v15  ;;  %v309_v55 = vand.u32 4294901760, %v308_v43 }
  0xb0   :  { %v1449_v37 = vsub.f32 %v113_v6, %v1432_v24  ;;  %v1452_v38 = vsub.f32 %v112_v7, %v1434_v25  ;;  %v1460_v47 = vand.u32 4294901760, %v1443_v32  ;;  %974 = vmatprep.subr.mxu0 %v1432_v24 }
  0xb1   :  { %68 = vadd.xlane.f32.xlu1 %v65_v9  ;;  %v288_v9 = vand.u32 4294901760, %v287_v62  ;;  %v110_v62 = vld [vmem:[#allocation7] sm:$0xff]  ;;  %975 = vmatpush3.msra.mxu0 %v1432_v24 }
  0xb2   :  { %v1464_v49 = vand.u32 4294901760, %v1449_v37  ;;  %v1467_v53 = vand.u32 4294901760, %v1452_v38  ;;  %v315_v56 = vsub.f32 %v1443_v32, %v1460_v47  ;;  %v1481_v6 = vand.u32 4294901760, %v110_v62  ;;  %976 = vmatprep.subr.mxu0 %v1434_v25 }
  0xb3   :  { %999 = vmatprep.subr.mxu1 %v288_v9  ;;  %977 = vmatpush3.msra.mxu0 %v1434_v25 }
  0xb4   :  { %1000 = vmatpush3.msra.mxu1 %v288_v9  ;;  %v322_v60 = vsub.f32 %v1449_v37, %v1464_v49  ;;  %v329_v61 = vsub.f32 %v1452_v38, %v1467_v53  ;;  %v316_v5 = vand.u32 4294901760, %v315_v56  ;;  %v336_v9 = vsub.f32 %v1455_v42, %v1470_v54  ;;  %978 = vmatprep.subr.mxu0 %v1437_v26 }
  0xb5   :  { %1001 = vmatprep.subr.mxu1 %v295_v30  ;;  %v1488_v10 = vsub.f32 %v110_v62, %v1481_v6  ;;  %979 = vmatpush3.msra.mxu0 %v1437_v26 }
  0xb6   :  { %1002 = vmatpush3.msra.mxu1 %v295_v30  ;;  %v323_v7 = vand.u32 4294901760, %v322_v60  ;;  %v330_v19 = vand.u32 4294901760, %v329_v61  ;;  %980 = vmatprep.subr.mxu0 %v1481_v6  ;;  %v337_v36 = vand.u32 4294901760, %v336_v9 }
  0xb7   :  { %1003 = vmatprep.subr.mxu1 %v302_v48  ;;  %v1493_v30 = vand.u32 4294901760, %v1488_v10  ;;  %981 = vmatpush3.msra.mxu0 %v1481_v6 }
  0xb8   :  { %1004 = vmatpush3.msra.mxu1 %v302_v48  ;;  %1020 = vmatprep.subr.mxu0 %v1310_v13 }
  0xb9   :  { %1005 = vmatprep.subr.mxu1 %v309_v55  ;;  %1676 = vst [vmem:[#allocation15_spill] sm:$0xff] %v1493_v30  ;;  %v343_v43 = vsub.f32 %v1488_v10, %v1493_v30 }
  0xba   :  { %1006 = vmatpush3.msra.mxu1 %v309_v55 }
  0xbb   :  { %1007 = vmatprep.subr.mxu1 %v316_v5  ;;  %v344_v48 = vand.u32 4294901760, %v343_v43 }
  0xbc   :  { %1008 = vmatpush3.msra.mxu1 %v316_v5 }
  0xbd   :  { %1009 = vmatprep.subr.mxu1 %v323_v7 }
  0xbe   :  { %1010 = vmatpush3.msra.mxu1 %v323_v7 }
  0xbf   :  { %1011 = vmatprep.subr.mxu1 %v330_v19 }
  0xc0   :  { %1012 = vmatpush3.msra.mxu1 %v330_v19 }
  0xc1   :  { %1013 = vmatprep.subr.mxu1 %v337_v36 }
  0xc2   :  { %1014 = vmatpush3.msra.mxu1 %v337_v36 }
  0xc3   :  { %1015 = vmatprep.subr.mxu1 %v344_v48 }
  0xc4   :  { %1016 = vmatpush3.msra.mxu1 %v344_v48 }
  0xc5   :  { %1055 = vmatprep.subr.mxu1 %v1307_v11 }
 0x136   :  { %v67_v55 = vpop.xlane.xlu1 %66 }
 0x137   :  { %v70_v56 = vmul.f32 0.007874016, %v67_v55 }
 0x139   :  { %1165 = vrsqrt.f32 %v70_v56  ;;  %vm74_vm0 = vcmp.eq.f32.partialorder %v70_v56, inf  ;;  %v77_v7 = vand.u32 2147483648, %v70_v56  ;;  %vm76_vm1 = vcmp.eq.f32.partialorder %v70_v56, 0.0 }
 0x13a   :  { %v69_v60 = vpop.xlane.xlu1 %68 }
 0x13b   :  { %v71_v61 = vmul.f32 0.007874016, %v69_v60 }
 0x13d   :  { %1167 = vrsqrt.f32 %v71_v61  ;;  %vm81_vm2 = vcmp.eq.f32.partialorder %v71_v61, inf  ;;  %v84_v48 = vand.u32 2147483648, %v71_v61  ;;  %vm83_vm3 = vcmp.eq.f32.partialorder %v71_v61, 0.0 }
 0x146   :  { %v1166_v62 = vpop.eup %1165 }
 0x147   :  { %v73_v5 = vmul.f32 %v1166_v62, %v70_v56  ;;  %v839_v62 = vld [vmem:[%s1667_s4] ss:$0 sm:$0xff] }
 0x149   :  { %v75_v9 = vsel %vm74_vm0, %v70_v56, %v73_v5  ;;  %v840_v56 = vld [vmem:[%s1668_s5] ss:$0 sm:$0xff] }
 0x14a   :  { %v1168_v19 = vpop.eup %1167  ;;  %v78_v43 = vsel %vm76_vm1, %v77_v7, %v75_v9 }
 0x14b   :  { %v86_v0 = vadd.f32 1e-06, %v78_v43  ;;  %v80_v36 = vmul.f32 %v1168_v19, %v71_v61 }
 0x14d   :  { %1169 = vrcp.f32 %v86_v0  ;;  %v82_v1 = vsel %vm81_vm2, %v71_v61, %v80_v36 }
 0x14e   :  { %v85_v55 = vsel %vm83_vm3, %v84_v48, %v82_v1 }
 0x14f   :  { %v87_v30 = vadd.f32 1e-06, %v85_v55 }
 0x151   :  { %1171 = vrcp.f32 %v87_v30 }
 0x15a   :  { %v1170_v60 = vpop.eup %1169 }
 0x15b   :  { %v92_v5 = vmul.f32 %v1170_v60, %v1298_v4 }
 0x15d   :  { %v100_v7 = vmul.f32 %v839_v62, %v92_v5 }
 0x15e   :  { %v1172_v9 = vpop.eup %1171 }
 0x15f   :  { %v108_v19 = vadd.f32 %v840_v56, %v100_v7  ;;  %v93_v0 = vmul.f32 %v1172_v9, %v1303_v8 }
 0x161   :  { %v1509_v61 = vand.u32 4294901760, %v108_v19  ;;  %v101_v1 = vmul.f32 %v839_v62, %v93_v0 }
 0x163   :  { %1017 = vmatprep.mubr.f32.mxu1 %v1509_v61  ;;  %v109_v30 = vadd.f32 %v840_v56, %v101_v1  ;;  %v215_v43 = vsub.f32 %v108_v19, %v1509_v61 }
 0x165   :  { %v1513_v36 = vand.u32 4294901760, %v109_v30  ;;  %v216_v4 = vand.u32 4294901760, %v215_v43 }
 0x167   :  { %1018 = vmatmul.mubr.f32.vlgmr.msra.gmra.mxu1 %v1513_v36  ;;  %v217_v48 = vsub.f32 %v215_v43, %v216_v4  ;;  %v1517_v55 = vsub.f32 %v109_v30, %v1513_v36 }
 0x168   :  { %1056 = vmatpush3.msra.mxu1 %v1307_v11  ;;  %1087 = vmatprep.mubr.f32.mxu1 %v216_v4 }
 0x169   :  { %1057 = vmatprep.subr.mxu1 %v1312_v14  ;;  %v218_v8 = vand.u32 4294901760, %v217_v48  ;;  %v226_v60 = vand.u32 4294901760, %v1517_v55 }
 0x16a   :  { %1058 = vmatpush3.msra.mxu1 %v1312_v14 }
 0x16b   :  { %1059 = vmatprep.subr.mxu1 %v1322_v18  ;;  %982 = vmatprep.mubr.f32.mxu0 %v218_v8  ;;  %v227_v62 = vsub.f32 %v1517_v55, %v226_v60 }
 0x16c   :  { %1060 = vmatpush3.msra.mxu1 %v1322_v18 }
 0x16d   :  { %1061 = vmatprep.subr.mxu1 %v1334_v23  ;;  %v228_v5 = vand.u32 4294901760, %v227_v62 }
 0x16e   :  { %1062 = vmatpush3.msra.mxu1 %v1334_v23 }
 0x16f   :  { %1063 = vmatprep.subr.mxu1 %v1347_v29  ;;  %983 = vmatmul.mubr.f32.vlgmr.msra.gmra.mxu0 %v228_v5 }
 0x170   :  { %1021 = vmatpush3.msra.mxu0 %v1310_v13  ;;  %1064 = vmatpush3.msra.mxu1 %v1347_v29 }
 0x171   :  { %1022 = vmatprep.subr.mxu0 %v1320_v17  ;;  %1052 = vmatprep.mubr.f32.mxu0 %v215_v43 }
 0x172   :  { %1065 = vmatprep.subr.mxu1 %v1355_v34  ;;  %1023 = vmatpush3.msra.mxu0 %v1320_v17 }
 0x173   :  { %1066 = vmatpush3.msra.mxu1 %v1355_v34  ;;  %1024 = vmatprep.subr.mxu0 %v1332_v22 }
 0x174   :  { %1067 = vmatprep.subr.mxu1 %v1366_v40  ;;  %1025 = vmatpush3.msra.mxu0 %v1332_v22 }
 0x175   :  { %1068 = vmatpush3.msra.mxu1 %v1366_v40  ;;  %1026 = vmatprep.subr.mxu0 %v1344_v28 }
 0x176   :  { %1069 = vmatprep.subr.mxu1 %v1379_v46  ;;  %1027 = vmatpush3.msra.mxu0 %v1344_v28 }
 0x177   :  { %1070 = vmatpush3.msra.mxu1 %v1379_v46  ;;  %1028 = vmatprep.subr.mxu0 %v1358_v35 }
 0x178   :  { %1071 = vmatprep.subr.mxu1 %v1393_v52  ;;  %1029 = vmatpush3.msra.mxu0 %v1358_v35 }
 0x179   :  { %1072 = vmatpush3.msra.mxu1 %v1393_v52  ;;  %1030 = vmatprep.subr.mxu0 %v1364_v39 }
 0x17a   :  { %1073 = vmatprep.subr.mxu1 %v1406_v59  ;;  %1031 = vmatpush3.msra.mxu0 %v1364_v39 }
 0x17b   :  { %1074 = vmatpush3.msra.mxu1 %v1406_v59  ;;  %1032 = vmatprep.subr.mxu0 %v1377_v45 }
 0x17c   :  { %1075 = vmatprep.subr.mxu1 %v1414_v2  ;;  %1033 = vmatpush3.msra.mxu0 %v1377_v45 }
 0x17d   :  { %1076 = vmatpush3.msra.mxu1 %v1414_v2  ;;  %1034 = vmatprep.subr.mxu0 %v1391_v51 }
 0x17e   :  { %1077 = vmatprep.subr.mxu1 %v1426_v15  ;;  %1035 = vmatpush3.msra.mxu0 %v1391_v51 }
 0x17f   :  { %1078 = vmatpush3.msra.mxu1 %v1426_v15  ;;  %1036 = vmatprep.subr.mxu0 %v1403_v58 }
 0x180   :  { %1079 = vmatprep.subr.mxu1 %v1432_v24  ;;  %1037 = vmatpush3.msra.mxu0 %v1403_v58  ;;  %v1678_v58 = vld [vmem:[#allocation14_spill] sm:$0xff] }
 0x181   :  { %1080 = vmatpush3.msra.mxu1 %v1432_v24  ;;  %1038 = vmatprep.subr.mxu0 %v1418_v3 }
 0x182   :  { %1081 = vmatprep.subr.mxu1 %v1434_v25  ;;  %1039 = vmatpush3.msra.mxu0 %v1418_v3 }
 0x183   :  { %1082 = vmatpush3.msra.mxu1 %v1434_v25  ;;  %1040 = vmatprep.subr.mxu0 %v1424_v12 }
 0x184   :  { %1083 = vmatprep.subr.mxu1 %v1437_v26  ;;  %1041 = vmatpush3.msra.mxu0 %v1424_v12 }
 0x185   :  { %1084 = vmatpush3.msra.mxu1 %v1437_v26  ;;  %1042 = vmatprep.subr.mxu0 %v1443_v32 }
 0x186   :  { %1085 = vmatprep.subr.mxu1 %v1481_v6  ;;  %1043 = vmatpush3.msra.mxu0 %v1443_v32 }
 0x187   :  { %1086 = vmatpush3.msra.mxu1 %v1481_v6  ;;  %1044 = vmatprep.subr.mxu0 %v1449_v37 }
 0x188   :  { %1088 = vmatmul.mubr.f32.vlgmr.msra.gmra.mxu1 %v226_v60  ;;  %1125 = vmatprep.subr.mxu1 %v1307_v11 }
 0x189   :  { %1045 = vmatpush3.msra.mxu0 %v1449_v37  ;;  %1126 = vmatpush3.msra.mxu1 %v1307_v11  ;;  %v1677_v11 = vld [vmem:[#allocation15_spill] sm:$0xff] }
 0x18a   :  { %1157 = vmatprep.mubr.f32.mxu1 %v1509_v61  ;;  %1046 = vmatprep.subr.mxu0 %v1452_v38 }
 0x18b   :  { %1127 = vmatprep.subr.mxu1 %v1312_v14  ;;  %1047 = vmatpush3.msra.mxu0 %v1452_v38 }
 0x18c   :  { %1128 = vmatpush3.msra.mxu1 %v1312_v14  ;;  %1048 = vmatprep.subr.mxu0 %v1455_v42  ;;  %v841_v14 = vld [vmem:[%s1666_s3] ss:$0 sm:$0xff]  ;;  %s1243_s3 = smov [#allocation9]  }
 0x18d   :  { %1129 = vmatprep.subr.mxu1 %v1322_v18  ;;  %1049 = vmatpush3.msra.mxu0 %v1455_v42  ;;  %s826_s10 = sshll.u32 %s1243_s3, 4  ;;  %s827_s10 = int_to_ptr.vmem [resolvable:$true] %s826_s10 }
 0x18e   :  { %1130 = vmatpush3.msra.mxu1 %v1322_v18  ;;  %1050 = vmatprep.subr.mxu0 %v1488_v10  ;;  %s1213_s11 = scalar_lea.vmem %s827_s10, 256  ;;  %p1218_p11 = scmp.lt.s32.totalorder %s827_s10, %s827_s10 }
 0x18f   :  { %1131 = vmatprep.subr.mxu1 %v1334_v23  ;;  %1051 = vmatpush3.msra.mxu0 %v1488_v10  ;;  %p1214_p10 = scmp.ne.s32.totalorder %s827_s10, %s1213_s11  ;;  %p1219_p12 = scmp.lt.s32.totalorder %s1213_s11, %s1213_s11 }
 0x190   :  { %1132 = vmatpush3.msra.mxu1 %v1334_v23  ;;  %1053 = vmatmul.mubr.f32.vlgmr.msra.gmra.mxu0 %v1517_v55 }
 0x191   :  { %1090 = vmatprep.subr.mxu0 %v1317_v16  ;;  %1133 = vmatprep.subr.mxu1 %v1347_v29  ;;  %p1220_p13 = por %p1219_p12, %p1218_p11 }
 0x192   :  { %1091 = vmatpush3.msra.mxu0 %v1317_v16  ;;  %1122 = vmatprep.mubr.f32.mxu0 %v1509_v61 }
 0x193   :  { %1134 = vmatpush3.msra.mxu1 %v1347_v29  ;;  %1092 = vmatprep.subr.mxu0 %v1329_v21  ;;  %p1221_p0 = pnand %p1220_p13, %p1214_p10 }
 0x194   :  { %1135 = vmatprep.subr.mxu1 %v1355_v34  ;;  %1093 = vmatpush3.msra.mxu0 %v1329_v21 }
 0x195   :  { %1136 = vmatpush3.msra.mxu1 %v1355_v34  ;;  %1094 = vmatprep.subr.mxu0 %v1341_v27 }
 0x196   :  { %1137 = vmatprep.subr.mxu1 %v1366_v40  ;;  %1095 = vmatpush3.msra.mxu0 %v1341_v27 }
 0x197   :  { %1138 = vmatpush3.msra.mxu1 %v1366_v40  ;;  %1096 = vmatprep.subr.mxu0 %v1353_v33 }
 0x198   :  { %1139 = vmatprep.subr.mxu1 %v1379_v46  ;;  %1097 = vmatpush3.msra.mxu0 %v1353_v33 }
 0x199   :  { %1140 = vmatpush3.msra.mxu1 %v1379_v46  ;;  %1098 = vmatprep.subr.mxu0 %v1370_v41 }
 0x19a   :  { %1141 = vmatprep.subr.mxu1 %v1393_v52  ;;  %1099 = vmatpush3.msra.mxu0 %v1370_v41 }
 0x19b   :  { %1142 = vmatpush3.msra.mxu1 %v1393_v52  ;;  %1100 = vmatprep.subr.mxu0 %v1374_v44 }
 0x19c   :  { %1143 = vmatprep.subr.mxu1 %v1406_v59  ;;  %1101 = vmatpush3.msra.mxu0 %v1374_v44 }
 0x19d   :  { %1144 = vmatpush3.msra.mxu1 %v1406_v59  ;;  %1102 = vmatprep.subr.mxu0 %v1388_v50 }
 0x19e   :  { %1145 = vmatprep.subr.mxu1 %v1414_v2  ;;  %1103 = vmatpush3.msra.mxu0 %v1388_v50 }
 0x19f   :  { %1146 = vmatpush3.msra.mxu1 %v1414_v2  ;;  %1104 = vmatprep.subr.mxu0 %v1400_v57  ;;  %v1679_v2 = vld [vmem:[#allocation13_spill] sm:$0xff] }
 0x1a0   :  { %1147 = vmatprep.subr.mxu1 %v1426_v15  ;;  %1105 = vmatpush3.msra.mxu0 %v1400_v57 }
 0x1a1   :  { %1148 = vmatpush3.msra.mxu1 %v1426_v15  ;;  %1106 = vmatprep.subr.mxu0 %v1412_v63 }
 0x1a2   :  { %1149 = vmatprep.subr.mxu1 %v1432_v24  ;;  %1107 = vmatpush3.msra.mxu0 %v1412_v63 }
 0x1a3   :  { %1150 = vmatpush3.msra.mxu1 %v1432_v24  ;;  %1108 = vmatprep.subr.mxu0 %v1430_v20 }
 0x1a4   :  { %1151 = vmatprep.subr.mxu1 %v1434_v25  ;;  %1109 = vmatpush3.msra.mxu0 %v1430_v20 }
 0x1a5   :  { %1152 = vmatpush3.msra.mxu1 %v1434_v25  ;;  %1110 = vmatprep.subr.mxu0 %v1440_v31 }
 0x1a6   :  { %1153 = vmatprep.subr.mxu1 %v1437_v26  ;;  %1111 = vmatpush3.msra.mxu0 %v1440_v31 }
 0x1a7   :  { %1154 = vmatpush3.msra.mxu1 %v1437_v26  ;;  %1112 = vmatprep.subr.mxu0 %v1460_v47 }
 0x1a8   :  { %1155 = vmatprep.subr.mxu1 %v1481_v6  ;;  %1113 = vmatpush3.msra.mxu0 %v1460_v47 }
 0x1a9   :  { %1156 = vmatpush3.msra.mxu1 %v1481_v6  ;;  %1114 = vmatprep.subr.mxu0 %v1464_v49 }
 0x1aa   :  { %1158 = vmatmul.mubr.f32.vlgmr.msra.gmra.mxu1 %v1513_v36  ;;  %1115 = vmatpush3.msra.mxu0 %v1464_v49 }
 0x1ab   :  { %1116 = vmatprep.subr.mxu0 %v1467_v53 }
 0x1ac   :  { %1117 = vmatpush3.msra.mxu0 %v1467_v53 }
 0x1ad   :  { %1118 = vmatprep.subr.mxu0 %v1470_v54 }
 0x1ae   :  { %1119 = vmatpush3.msra.mxu0 %v1470_v54 }
 0x1af   :  { %1120 = vmatprep.subr.mxu0 %v1677_v11 }
 0x1b0   :  { %1121 = vmatpush3.msra.mxu0 %v1677_v11 }
 0x1b1   :  { %1123 = vmatmul.mubr.f32.vlgmr.msra.gmra.mxu0 %v1513_v36 }
 0x227   :  { %v1019_v16 = vpop.f32.mrf.mxu1 }
 0x229   :  { %v381_v23 = vpop.f32.mrf.mxu1 }
 0x22f   :  { %v984_v13 = vpop.f32.mrf.mxu0 }
 0x230   :  { %v231_v18 = vadd.f32 %v984_v13, %v841_v14 }
 0x231   :  { %v220_v17 = vpop.f32.mrf.mxu0 }
 0x232   :  { %v221_v22 = vadd.f32 %v841_v14, %v220_v17  ;;  %v388_v27 = vadd.f32 %v1019_v16, %v231_v18 }
 0x234   :  { %v382_v34 = vadd.f32 %v381_v23, %v221_v22 }
 0x248   :  { %v1089_v28 = vpop.f32.mrf.mxu1 }
 0x24a   :  { %v587_v39 = vpop.f32.mrf.mxu1 }
 0x250   :  { %v1054_v21 = vpop.f32.mrf.mxu0 }
 0x251   :  { %v499_v33 = vadd.f32 %v1054_v21, %v388_v27 }
 0x252   :  { %v491_v29 = vpop.f32.mrf.mxu0 }
 0x253   :  { %v492_v35 = vadd.f32 %v491_v29, %v382_v34  ;;  %v596_v40 = vadd.f32 %v1089_v28, %v499_v33 }
 0x255   :  { %v588_v46 = vadd.f32 %v587_v39, %v492_v35 }
 0x26a   :  { %v1159_v41 = vpop.f32.mrf.mxu1 }
 0x26c   :  { %v807_v57 = vpop.f32.mrf.mxu1 }
 0x271   :  { %v1124_v44 = vpop.f32.mrf.mxu0 }
 0x272   :  { %v721_v45 = vadd.f32 %v1124_v44, %v596_v40 }
 0x273   :  { %v714_v50 = vpop.f32.mrf.mxu0 }
 0x274   :  { %v814_v51 = vadd.f32 %v1159_v41, %v721_v45  ;;  %v715_v52 = vadd.f32 %v714_v50, %v588_v46 }
 0x276   :  { %v818_v59 = vadd.f32 %v814_v51, %v1678_v58  ;;  %v808_v63 = vadd.f32 %v807_v57, %v715_v52 }
 0x278   :  { %820 = vst [vmem:[#allocation9 + $0x8] sm:$0xff] %v818_v59  ;;  %v817_v3 = vadd.f32 %v808_v63, %v1679_v2 }
 0x27a   :  { %819 = vst [vmem:[#allocation9] sm:$0xff] %v817_v3 }
 0x27b   :  { %1224 = shalt.err (!%p1221_p0)
}
 0x27c   :  { %832 = dma.vmem_to_hbm [thread:$0]  %s827_s10, 256, %s1669_s6, [#allocation6], %s1240_s23, %s1240_s23, %s1241_s24  }
 0x27d   :  { %1237 = dma.done.wait [#allocation6], 256  }
 0x27e   :  { %1238 = vsyncadd [#allocation6], 4294967040 }
 0x27f   :  { %836 = vsyncpa [#allocation5], 1 }
 0x280   :  { %837 = vsyncpa [#allocation8], 1 }
 0x281   :  { %838 = vsyncpa [#allocation6], 1 }

</bundles_post_ra>
